<compile_context>
chip_gen: v7x
topology: tpu7x:2x2x1
jax: 0.10.0
libtpu: 0.0.40
codegen_flags: <defaults>
</compile_context>

<pallas_src>
import jax
import jax.numpy as jnp
from jax.experimental import pallas as pl
from jax.experimental.pallas import tpu as pltpu

_LANE = 128
_VMEM_BUDGET = 48 << 20        # total scoped-VMEM target (safe on v7x's 64 MiB/TC)
_WEIGHT_BUDGET = 40 << 20      # residency budget for weights incl. 2x pipeline buffers


def _round_up(n, m):
    return ((n + m - 1) // m) * m


def _cdiv(a, b):
    return -(-a // b)


def _geometry(x_dim, z_dim):
    """Padded dims and decoder-column tile size (static, derived from dims only)."""
    xp_in = _round_up(x_dim, _LANE)                 # encoder input / We rows
    zp = _round_up(max(z_dim, _LANE), _LANE)        # latent dim (full MXU depth)
    we_res = 2 * (xp_in * zp * 2)                   # bf16 We, 2 pipeline buffers
    wd_full = 2 * (zp * _round_up(x_dim, _LANE) * 2)
    if we_res + wd_full <= _WEIGHT_BUDGET:
        tc = _round_up(x_dim, _LANE)                # common case: Wd fully resident
    else:
        # Fallback: tile decoder output columns so only a slice of Wd is resident.
        avail = max(_WEIGHT_BUDGET - we_res, 0)
        tc = (avail // (2 * zp * 2)) // _LANE * _LANE
        tc = max(_LANE, min(tc, _round_up(x_dim, _LANE)))
        # TODO(synk): if We alone exceeds the budget the encoder contraction dim
        # would also need tiling; not implemented (atypical for this AE's dims).
    xp_out = _round_up(x_dim, tc)                   # decoder output columns (padded)
    return xp_in, zp, xp_out, tc


def pack_params(we, be, wd, bd):
    """Pad + cast weights ONCE (hoisted out of the per-call path)."""
    x_dim, z_dim = we.shape
    assert wd.shape == (z_dim, x_dim)
    assert be.shape == (z_dim,)
    assert bd.shape == (x_dim,)
    xp_in, zp, xp_out, _ = _geometry(x_dim, z_dim)
    we_p = jnp.zeros((xp_in, zp), jnp.bfloat16).at[:x_dim, :z_dim].set(
        we.astype(jnp.bfloat16))
    wd_p = jnp.zeros((zp, xp_out), jnp.bfloat16).at[:z_dim, :x_dim].set(
        wd.astype(jnp.bfloat16))
    be_p = jnp.zeros((1, zp), jnp.float32).at[0, :z_dim].set(be.astype(jnp.float32))
    bd_p = jnp.zeros((1, xp_out), jnp.float32).at[0, :x_dim].set(bd.astype(jnp.float32))
    return {"we": we_p, "be": be_p, "wd": wd_p, "bd": bd_p,
            "x_dim": x_dim, "z_dim": z_dim}


def _choose_batch_tile(B, xp_in, zp, tc, weight_bytes, out_itemsize, batch_tile):
    """VMEM-aware batch tile; >=2 grid steps for B>16 (feeds both v7x TCs)."""
    if batch_tile is not None:
        tb = max(16, _round_up(batch_tile, 16))
        return tb, tb * _cdiv(max(B, 1), tb)
    io_budget = max(_VMEM_BUDGET - 2 * weight_bytes, 0)
    per_row = 2 * (xp_in * 2 + tc * out_itemsize) + zp * 2   # 2-buf x + out, z scratch
    tb_cap = max(16, min(1024, (io_budget // per_row) // 16 * 16))
    b16 = _round_up(max(B, 1), 16)
    if b16 <= 16:
        return 16, 16
    n_tiles = max(2, _cdiv(b16, tb_cap))
    tb = min(tb_cap, _round_up(_cdiv(B, n_tiles), 16))
    n_tiles = _cdiv(B, tb)
    return tb, tb * n_tiles


def autoencoder_kernel(x_ref, we_ref, be_ref, wd_ref, bd_ref, out_ref, z_ref):
    """Fused encoder+decoder forward on one (batch tile, decoder-column tile).

    x_ref  : [TB, XP_IN]  bf16 (streamed, resident across the column axis)
    we_ref : [XP_IN, ZP]  bf16 (resident)
    be_ref : [1, ZP]      f32  (resident)
    wd_ref : [ZP, TC]     bf16 (column tile; fully resident when grid[1] == 1)
    bd_ref : [1, TC]      f32
    out_ref: [TB, TC]     bf16/f32
    z_ref  : [TB, ZP]     bf16 VMEM scratch (encoder output, cached per batch tile)
    """
    # Encoder runs once per batch tile (first column step) and caches z in VMEM.
    @pl.when(pl.program_id(1) == 0)
    def _():
        z = jnp.dot(x_ref[...], we_ref[...], preferred_element_type=jnp.float32)
        z = jnp.maximum(z + be_ref[...], 0.0)
        z_ref[...] = z.astype(jnp.bfloat16)

    # Decoder: bf16 MXU matmul with f32 accumulation; bias + sigmoid in f32.
    y = jnp.dot(z_ref[...], wd_ref[...], preferred_element_type=jnp.float32) + bd_ref[...]
    out_ref[...] = jax.nn.sigmoid(y).astype(out_ref.dtype)


def autoencoder_forward(x, params, *, out_dtype=jnp.bfloat16, batch_tile=None):
    """Fused AE forward via a (batch, decoder-column) gridded pallas_call."""
    x_dim, z_dim = params["x_dim"], params["z_dim"]
    we_p, be_p, wd_p, bd_p = params["we"], params["be"], params["wd"], params["bd"]
    B = x.shape[0]
    assert x.shape == (B, x_dim)

    xp_in, zp, xp_out, tc = _geometry(x_dim, z_dim)
    assert we_p.shape == (xp_in, zp) and wd_p.shape == (zp, xp_out)
    assert be_p.shape == (1, zp) and bd_p.shape == (1, xp_out)

    out_itemsize = jnp.dtype(out_dtype).itemsize
    # Resident bytes per pipeline buffer (Pallas allocates 2 even for constant maps).
    weight_bytes = (we_p.size * 2 + be_p.size * 4 + zp * tc * 2 + tc * 4)
    tb, b_pad = _choose_batch_tile(B, xp_in, zp, tc, weight_bytes, out_itemsize,
                                   batch_tile)

    # Stream x as bf16; skip the pad pass entirely when shapes already line up.
    if x.dtype == jnp.bfloat16 and B == b_pad and x_dim == xp_in:
        x_p = x
    else:
        x_p = jnp.pad(x.astype(jnp.bfloat16),
                      ((0, b_pad - B), (0, xp_in - x_dim)))

    grid = (b_pad // tb, xp_out // tc)

    # Honest VMEM accounting: 2 pipeline buffers for every input + output tile,
    # plus the z scratch; 1.5x headroom, capped at 48 MiB (v7x-safe).
    vmem_need = (2 * weight_bytes
                 + 2 * tb * xp_in * 2          # x tile, bf16, double-buffered
                 + 2 * tb * tc * out_itemsize  # out tile, double-buffered
                 + tb * zp * 2)                # z scratch
    vmem_limit = int(min(_VMEM_BUDGET, max(16 << 20, int(1.5 * vmem_need))))

    cost = pl.CostEstimate(
        flops=2 * b_pad * zp * (xp_in + xp_out),     # encoder + decoder matmuls
        transcendentals=b_pad * xp_out,              # sigmoid exp
        bytes_accessed=(x_p.size * 2                 # bf16 x stream
                        + b_pad * xp_out * out_itemsize
                        + (we_p.size + wd_p.size) * 2
                        + (be_p.size + bd_p.size) * 4),
    )

    out = pl.pallas_call(
        autoencoder_kernel,
        out_shape=jax.ShapeDtypeStruct((b_pad, xp_out), out_dtype),
        grid=grid,
        in_specs=[
            pl.BlockSpec((tb, xp_in), lambda i, j: (i, 0)),     # x tile
            pl.BlockSpec((xp_in, zp), lambda i, j: (0, 0)),     # resident We
            pl.BlockSpec((1, zp), lambda i, j: (0, 0)),         # resident be
            pl.BlockSpec((zp, tc), lambda i, j: (0, j)),        # Wd column tile
            pl.BlockSpec((1, tc), lambda i, j: (0, j)),         # bd column tile
        ],
        out_specs=pl.BlockSpec((tb, tc), lambda i, j: (i, j)),
        scratch_shapes=[pltpu.VMEM((tb, zp), jnp.bfloat16)],    # cached encoder output
        compiler_params=pltpu.CompilerParams(
            dimension_semantics=("parallel", "arbitrary"),
            vmem_limit_bytes=vmem_limit,
        ),
        cost_estimate=cost,
    )(x_p, we_p, be_p, wd_p, bd_p)

    if B == b_pad and x_dim == xp_out:
        return out
    return out[:B, :x_dim]


def init_params(key, x_dim, z_dim):
    """Deterministic PyTorch-Linear-style uniform init."""
    k1, k2, k3, k4 = jax.random.split(key, 4)
    bound_e = 1.0 / jnp.sqrt(x_dim)
    bound_d = 1.0 / jnp.sqrt(z_dim)
    we = jax.random.uniform(k1, (x_dim, z_dim), jnp.float32, -bound_e, bound_e)
    be = jax.random.uniform(k2, (z_dim,), jnp.float32, -bound_e, bound_e)
    wd = jax.random.uniform(k3, (z_dim, x_dim), jnp.float32, -bound_d, bound_d)
    bd = jax.random.uniform(k4, (x_dim,), jnp.float32, -bound_d, bound_d)
    return we, be, wd, bd


if __name__ == "__main__":
    # Small shapes consistent with the module: height=width=16 -> x_dim=256, z_dim=32.
    B, H, W, Z = 2, 16, 16, 32
    X_DIM = H * W
    key = jax.random.PRNGKey(0)
    kx, kp = jax.random.split(key)

    x = jax.random.uniform(kx, (B, X_DIM), jnp.float32)   # flattened [B, H*W] image
    we, be, wd, bd = init_params(kp, X_DIM, Z)

    # Weights are packed (padded + cast to bf16) ONCE, outside the forward path.
    params = pack_params(we, be, wd, bd)

    out = autoencoder_forward(x, params)
    out = jax.block_until_ready(out)

    # Reference check in plain JAX (f32). Kernel streams bf16 activations and
    # returns bf16 output, so allow tolerance for the bf16 rounding.
    z_ref = jnp.maximum(x @ we + be, 0.0)
    x_rec = jax.nn.sigmoid(z_ref @ wd + bd)
    assert out.shape == (B, X_DIM)
    err = float(jnp.max(jnp.abs(out.astype(jnp.float32) - x_rec)))
    assert err < 2e-2, err

    print("KERNEL_OK")
</pallas_src>

<mosaic_0001>
module attributes {stable_mosaic.version = 11 : i64} {
  func.func @autoencoder_kernel(%arg0: i32, %arg1: i32, %arg2: memref<16x256xbf16, #tpu.memory_space<vmem>>, %arg3: memref<256x128xbf16, #tpu.memory_space<vmem>>, %arg4: memref<1x128xf32, #tpu.memory_space<vmem>>, %arg5: memref<128x256xbf16, #tpu.memory_space<vmem>>, %arg6: memref<1x256xf32, #tpu.memory_space<vmem>>, %arg7: memref<16x256xbf16, #tpu.memory_space<vmem>>, %arg8: memref<16x128xbf16, #tpu.memory_space<vmem>>) attributes {dimension_semantics = [#tpu.dimension_semantics<parallel>, #tpu.dimension_semantics<arbitrary>], iteration_bounds = array<i64: 1, 1>, scalar_prefetch = 0 : i64, scratch_operands = 1 : i64, tpu.core_type = #tpu.core_type<tc>, window_params = [{transform_indices = @transform_0, window_bounds = array<i64: 16, 256>}, {pipeline_mode = #tpu.pipeline_mode<synchronous>, transform_indices = @transform_1, window_bounds = array<i64: 256, 128>}, {pipeline_mode = #tpu.pipeline_mode<synchronous>, transform_indices = @transform_2, window_bounds = array<i64: 1, 128>}, {transform_indices = @transform_3, window_bounds = array<i64: 128, 256>}, {transform_indices = @transform_4, window_bounds = array<i64: 1, 256>}, {transform_indices = @transform_5, window_bounds = array<i64: 16, 256>}]} {
    %c0_i32 = arith.constant 0 : i32
    %0 = arith.cmpi eq, %arg1, %c0_i32 : i32
    %1 = arith.extui %0 : i1 to i32
    %c0_i32_0 = arith.constant 0 : i32
    %2 = arith.cmpi ne, %1, %c0_i32_0 : i32
    scf.if %2 {
      %c0_9 = arith.constant 0 : index
      %c0_10 = arith.constant 0 : index
      %16 = vector.load %arg2[%c0_9, %c0_10] : memref<16x256xbf16, #tpu.memory_space<vmem>>, vector<16x256xbf16>
      %c0_11 = arith.constant 0 : index
      %c0_12 = arith.constant 0 : index
      %17 = vector.load %arg3[%c0_11, %c0_12] : memref<256x128xbf16, #tpu.memory_space<vmem>>, vector<256x128xbf16>
      %cst_13 = arith.constant dense<0.000000e+00> : vector<16x128xf32>
      %18 = tpu.matmul %16, %17, %cst_13 {dimension_numbers = #tpu.dot_dimension_numbers<[1], [0], [0], [1], [0, 0, 1, 1], [], []>} : vector<16x256xbf16>, vector<256x128xbf16>, vector<16x128xf32> -> vector<16x128xf32>
      %c0_14 = arith.constant 0 : index
      %c0_15 = arith.constant 0 : index
      %19 = vector.load %arg4[%c0_14, %c0_15] : memref<1x128xf32, #tpu.memory_space<vmem>>, vector<1x128xf32>
      %20 = vector.broadcast %19 : vector<1x128xf32> to vector<16x128xf32>
      %21 = arith.addf %18, %20 : vector<16x128xf32>
      %cst_16 = arith.constant 0.000000e+00 : f32
      %22 = vector.broadcast %cst_16 : f32 to vector<16x128xf32>
      %23 = arith.maximumf %21, %22 : vector<16x128xf32>
      %24 = arith.truncf %23 : vector<16x128xf32> to vector<16x128xbf16>
      %c0_17 = arith.constant 0 : index
      %c0_18 = arith.constant 0 : index
      %25 = vector.load %arg8[%c0_17, %c0_18] : memref<16x128xbf16, #tpu.memory_space<vmem>>, vector<16x128xbf16>
      tpu.vector_store %arg8[%c0_17, %c0_18], %24 {strides = array<i32>} : memref<16x128xbf16, #tpu.memory_space<vmem>>, vector<16x128xbf16>,
    } else {
    }
    %c0 = arith.constant 0 : index
    %c0_1 = arith.constant 0 : index
    %3 = vector.load %arg8[%c0, %c0_1] : memref<16x128xbf16, #tpu.memory_space<vmem>>, vector<16x128xbf16>
    %c0_2 = arith.constant 0 : index
    %c0_3 = arith.constant 0 : index
    %4 = vector.load %arg5[%c0_2, %c0_3] : memref<128x256xbf16, #tpu.memory_space<vmem>>, vector<128x256xbf16>
    %cst = arith.constant dense<0.000000e+00> : vector<16x256xf32>
    %5 = tpu.matmul %3, %4, %cst {dimension_numbers = #tpu.dot_dimension_numbers<[1], [0], [0], [1], [0, 0, 1, 1], [], []>} : vector<16x128xbf16>, vector<128x256xbf16>, vector<16x256xf32> -> vector<16x256xf32>
    %c0_4 = arith.constant 0 : index
    %c0_5 = arith.constant 0 : index
    %6 = vector.load %arg6[%c0_4, %c0_5] : memref<1x256xf32, #tpu.memory_space<vmem>>, vector<1x256xf32>
    %7 = vector.broadcast %6 : vector<1x256xf32> to vector<16x256xf32>
    %8 = arith.addf %5, %7 : vector<16x256xf32>
    %9 = arith.negf %8 : vector<16x256xf32>
    %10 = math.exp %9 : vector<16x256xf32>
    %cst_6 = arith.constant 1.000000e+00 : f32
    %11 = vector.broadcast %cst_6 : f32 to vector<16x256xf32>
    %12 = arith.addf %11, %10 : vector<16x256xf32>
    %13 = arith.divf %11, %12 : vector<16x256xf32>
    %14 = arith.truncf %13 : vector<16x256xf32> to vector<16x256xbf16>
    %c0_7 = arith.constant 0 : index
    %c0_8 = arith.constant 0 : index
    %15 = vector.load %arg7[%c0_7, %c0_8] : memref<16x256xbf16, #tpu.memory_space<vmem>>, vector<16x256xbf16>
    tpu.vector_store %arg7[%c0_7, %c0_8], %14 {strides = array<i32>} : memref<16x256xbf16, #tpu.memory_space<vmem>>, vector<16x256xbf16>,
    return
  }
  func.func @transform_0(%arg0: i32, %arg1: i32) -> (i32, i32) {
    %c0_i32 = arith.constant 0 : i32
    %c0_i32_0 = arith.constant 0 : i32
    return %arg0, %c0_i32 : i32, i32
  }
  func.func @transform_1(%arg0: i32, %arg1: i32) -> (i32, i32) {
    %c0_i32 = arith.constant 0 : i32
    %c0_i32_0 = arith.constant 0 : i32
    %c0_i32_1 = arith.constant 0 : i32
    return %c0_i32, %c0_i32_0 : i32, i32
  }
  func.func @transform_2(%arg0: i32, %arg1: i32) -> (i32, i32) {
    %c0_i32 = arith.constant 0 : i32
    %c0_i32_0 = arith.constant 0 : i32
    %c0_i32_1 = arith.constant 0 : i32
    return %c0_i32, %c0_i32_0 : i32, i32
  }
  func.func @transform_3(%arg0: i32, %arg1: i32) -> (i32, i32) {
    %c0_i32 = arith.constant 0 : i32
    %c0_i32_0 = arith.constant 0 : i32
    return %c0_i32, %arg1 : i32, i32
  }
  func.func @transform_4(%arg0: i32, %arg1: i32) -> (i32, i32) {
    %c0_i32 = arith.constant 0 : i32
    %c0_i32_0 = arith.constant 0 : i32
    return %c0_i32, %arg1 : i32, i32
  }
  func.func @transform_5(%arg0: i32, %arg1: i32) -> (i32, i32) {
    %c0_i32 = arith.constant 0 : i32
    return %arg0, %arg1 : i32, i32
  }
}

</mosaic_0001>

<bundles_post_ra>
// kernel: tpu_custom_call.1
= control target key start
LH: loop header
LB: loop body
LE: loop exit
PB: predicated region body
PF: predicated region fallthrough
CT: control target
= control target key end

     0   :  { %10 = vsyncpa [#allocation4], 0  ;;  %s796_s0 = inlined_call_operand.hbm [shape: bf16[16,256], index: 0, kind: input, shape index: {}]   ;;  %s797_s1 = inlined_call_operand.hbm [shape: bf16[256,128], index: 1, kind: input, shape index: {}]   ;;  %s798_s2 = inlined_call_operand.vmem [shape: f32[1,128], index: 2, kind: input, shape index: {}]   ;;  %s799_s3 = inlined_call_operand.hbm [shape: bf16[128,256], index: 3, kind: input, shape index: {}]   ;;  %s800_s4 = inlined_call_operand.vmem [shape: f32[1,256], index: 4, kind: input, shape index: {}]   ;;  %s801_s5 = inlined_call_operand.hbm [shape: bf16[16,256], index: 5, kind: output, shape index: {}]  }
   0x1   :  { %11 = vsyncpa [#allocation7], 0 }
   0x2   :  { %12 = vsyncpa [#allocation5], 0  ;;  %s694_s18 = smov [#allocation6]   ;;  %s600_s22 = scalar_lea.hbm %s797_s1, 2048 }
   0x3   :  { %s30_s19 = sshll.u32 %s694_s18, 4  ;;  %p601_p0 = scmp.ne.s32.totalorder %s797_s1, %s600_s22  ;;  %s31_s19 = int_to_ptr.vmem [resolvable:$true] %s30_s19 }
   0x4   :  { %p604_p1 = scmp.lt.u32.totalorder %s600_s22, %s797_s1 }
   0x6   :  { %p606_p2 = pnand %p604_p1, %p601_p0 }
   0x8   :  { %609 = shalt.err (!%p606_p2)
}
   0x9   :  { %s610_s27 = scalar_lea.vmem %s31_s19, 2048  ;;  %p615_p4 = scmp.lt.s32.totalorder %s31_s19, %s31_s19 }
   0xa   :  { %p611_p3 = scmp.ne.s32.totalorder %s31_s19, %s610_s27  ;;  %p616_p5 = scmp.lt.s32.totalorder %s610_s27, %s610_s27 }
   0xc   :  { %p617_p6 = por %p616_p5, %p615_p4 }
   0xe   :  { %p618_p7 = pnand %p617_p6, %p611_p3 }
  0x10   :  { %621 = shalt.err (!%p618_p7)
}
  0x11   :  { %s695_s28 = smov 64   ;;  %s696_s29 = smov 4  }
  0x12   :  { %36 = dma.hbm_to_vmem [thread:$0]  %s797_s1, 2048, %s31_s19, [#allocation7], %s695_s28, %s695_s28, %s696_s29  }
  0x13   :  { %s697_s7 = smov [#allocation3]   ;;  %s622_s11 = scalar_lea.hbm %s796_s0, 256 }
  0x14   :  { %s18_s8 = sshll.u32 %s697_s7, 4  ;;  %p623_p8 = scmp.ne.s32.totalorder %s796_s0, %s622_s11  ;;  %s19_s8 = int_to_ptr.vmem [resolvable:$true] %s18_s8 }
  0x15   :  { %p626_p9 = scmp.lt.u32.totalorder %s622_s11, %s796_s0 }
  0x17   :  { %p628_p10 = pnand %p626_p9, %p623_p8 }
  0x19   :  { %631 = shalt.err (!%p628_p10)
}
  0x1a   :  { %s632_s16 = scalar_lea.vmem %s19_s8, 256  ;;  %p637_p12 = scmp.lt.s32.totalorder %s19_s8, %s19_s8 }
  0x1b   :  { %p633_p11 = scmp.ne.s32.totalorder %s19_s8, %s632_s16  ;;  %p638_p13 = scmp.lt.s32.totalorder %s632_s16, %s632_s16 }
  0x1d   :  { %p639_p0 = por %p638_p13, %p637_p12 }
  0x1f   :  { %p640_p1 = pnand %p639_p0, %p633_p11 }
  0x21   :  { %643 = shalt.err (!%p640_p1)
}
  0x22   :  { %s698_s1 = smov 128   ;;  %s699_s17 = smov 8  }
  0x23   :  { %24 = dma.hbm_to_vmem [thread:$0]  %s796_s0, 256, %s19_s8, [#allocation4], %s698_s1, %s698_s1, %s699_s17  }
  0x24   :  { %s700_s20 = smov [#allocation8]   ;;  %s644_s24 = scalar_lea.hbm %s799_s3, 2048 }
  0x25   :  { %s44_s21 = sshll.u32 %s700_s20, 4  ;;  %p645_p2 = scmp.ne.s32.totalorder %s799_s3, %s644_s24  ;;  %s45_s21 = int_to_ptr.vmem [resolvable:$true] %s44_s21 }
  0x26   :  { %p648_p3 = scmp.lt.u32.totalorder %s644_s24, %s799_s3 }
  0x28   :  { %p650_p4 = pnand %p648_p3, %p645_p2 }
  0x2a   :  { %653 = shalt.err (!%p650_p4)
}
  0x2b   :  { %s654_s29 = scalar_lea.vmem %s45_s21, 2048  ;;  %p659_p6 = scmp.lt.s32.totalorder %s45_s21, %s45_s21 }
  0x2c   :  { %p655_p5 = scmp.ne.s32.totalorder %s45_s21, %s654_s29  ;;  %p660_p7 = scmp.lt.s32.totalorder %s654_s29, %s654_s29 }
  0x2e   :  { %p661_p8 = por %p660_p7, %p659_p6 }
  0x30   :  { %p662_p9 = pnand %p661_p8, %p655_p5 }
  0x32   :  { %665 = shalt.err (!%p662_p9)
}
  0x33   :  { %50 = dma.hbm_to_vmem [thread:$0]  %s799_s3, 2048, %s45_s21, [#allocation7], %s698_s1, %s698_s1, %s699_s17  }
  0x34   :  { %688 = dma.done.wait [#allocation4], 256  }
  0x35   :  { %689 = vsyncadd [#allocation4], 4294967040 }
  0x36   :  { %690 = dma.done.wait [#allocation7], 4096  }
  0x37   :  { %691 = vsyncadd [#allocation7], 4294963200  ;;  %v541_v0 = vld [vmem:[#allocation6 + $0x40] sm:$0xff]   ;;  %v543_v2 = vld [vmem:[#allocation6 + $0x48] sm:$0xff]   ;;  %v701_v34 = vmov 0   ;;  %v278_v47 = vlaneseq }
  0x38   :  { %v542_v1 = vld [vmem:[#allocation6] sm:$0xff]   ;;  %510 = vmatprep.subr.bf16.mxu0 %v541_v0  ;;  %v544_v3 = vld [vmem:[#allocation6 + $0x8] sm:$0xff]   ;;  %v545_v4 = vld [vmem:[#allocation6 + $0x50] sm:$0xff]   ;;  %400 = vmatprep.mubr.bf16.mxu1 %v701_v34 }
  0x39   :  { %511 = vmatpush3.bf16.msra.mxu0 %v542_v1  ;;  %v546_v5 = vld [vmem:[#allocation6 + $0x10] sm:$0xff]   ;;  %v547_v6 = vld [vmem:[#allocation6 + $0x58] sm:$0xff]   ;;  %v549_v8 = vld [vmem:[#allocation6 + $0x60] sm:$0xff]   ;;  %v279_v48 = vshrl.u32 %v278_v47, 7 }
  0x3a   :  { %512 = vmatprep.subr.bf16.mxu0 %v543_v2  ;;  %v548_v7 = vld [vmem:[#allocation6 + $0x18] sm:$0xff]   ;;  %v550_v9 = vld [vmem:[#allocation6 + $0x20] sm:$0xff]   ;;  %v551_v10 = vld [vmem:[#allocation6 + $0x68] sm:$0xff]  }
  0x3b   :  { %v559_v11 = vld [vmem:[#allocation3 + $0x4] ss:$8 sps:$4 sm:$0xff]   ;;  %v560_v12 = vld [vmem:[#allocation8 + $0x4] ss:$8 sps:$4 sm:$0xff]   ;;  %v562_v13 = vld [vmem:[#allocation8] ss:$8 sps:$4 sm:$0xff]  }
  0x3c   :  { %v552_v14 = vld [vmem:[#allocation6 + $0x28] sm:$0xff]   ;;  %246 = vmatprep.mubr.bf16.mxu0 %v559_v11  ;;  %v563_v15 = vld [vmem:[#allocation8 + $0x14] ss:$8 sps:$4 sm:$0xff]   ;;  %368 = vmatprep.subr.bf16.mxu1 %v560_v12  ;;  %v565_v17 = vld [vmem:[#allocation8 + $0x10] ss:$8 sps:$4 sm:$0xff]   ;;  %v280_v49 = vsub.s32 0, %v279_v48 }
  0x3d   :  { %513 = vmatpush3.bf16.msra.mxu0 %v544_v3  ;;  %v553_v16 = vld [vmem:[#allocation6 + $0x70] sm:$0xff]   ;;  %369 = vmatpush1.bf16.msra.mxu1 %v562_v13  ;;  %v566_v19 = vld [vmem:[#allocation8 + $0x24] ss:$8 sps:$4 sm:$0xff]   ;;  %v555_v20 = vld [vmem:[#allocation6 + $0x78] sm:$0xff]   ;;  %v284_v51 = vsub.s32 1, %v279_v48 }
  0x3e   :  { %514 = vmatprep.subr.bf16.mxu0 %v545_v4  ;;  %v554_v18 = vld [vmem:[#allocation6 + $0x30] sm:$0xff]   ;;  %370 = vmatprep.subr.bf16.mxu1 %v563_v15  ;;  %v568_v21 = vld [vmem:[#allocation8 + $0x20] ss:$8 sps:$4 sm:$0xff]   ;;  %v556_v23 = vld [vmem:[#allocation6 + $0x38] sm:$0xff]  }
  0x3f   :  { %v569_v22 = vld [vmem:[#allocation8 + $0x34] ss:$8 sps:$4 sm:$0xff]   ;;  %v571_v24 = vld [vmem:[#allocation8 + $0x30] ss:$8 sps:$4 sm:$0xff]   ;;  %v572_v26 = vld [vmem:[#allocation8 + $0x44] ss:$8 sps:$4 sm:$0xff]  }
  0x40   :  { %v557_v25 = vld [vmem:[#allocation3] ss:$8 sps:$4 sm:$0xff]   ;;  %v574_v27 = vld [vmem:[#allocation8 + $0x40] ss:$8 sps:$4 sm:$0xff]   ;;  %v575_v28 = vld [vmem:[#allocation8 + $0x54] ss:$8 sps:$4 sm:$0xff]  }
  0x41   :  { %515 = vmatpush3.bf16.msra.mxu0 %v546_v5  ;;  %371 = vmatpush1.bf16.msra.mxu1 %v565_v17  ;;  %v577_v29 = vld [vmem:[#allocation8 + $0x50] ss:$8 sps:$4 sm:$0xff]   ;;  %v578_v30 = vld [vmem:[#allocation8 + $0x64] ss:$8 sps:$4 sm:$0xff]   ;;  %v580_v31 = vld [vmem:[#allocation8 + $0x60] ss:$8 sps:$4 sm:$0xff]  }
  0x42   :  { %516 = vmatprep.subr.bf16.mxu0 %v547_v6  ;;  %372 = vmatprep.subr.bf16.mxu1 %v566_v19  ;;  %v581_v32 = vld [vmem:[#allocation8 + $0x74] ss:$8 sps:$4 sm:$0xff]   ;;  %v583_v33 = vld [vmem:[#allocation8 + $0x70] ss:$8 sps:$4 sm:$0xff]  }
  0x43   :  { %v467_v36 = vld [vmem:[%s798_s2] ss:$0 sm:$0xff]  ;;  %s702_s2 = smov [#allocation9]  }
  0x44   :  { %v276_v50 = vld [vmem:[%s800_s4] sm:$0x3]  ;;  %s454_s4 = sshll.u32 %s702_s2, 4  ;;  %s455_s4 = int_to_ptr.vmem [resolvable:$true] %s454_s4 }
  0x45   :  { %517 = vmatpush3.bf16.msra.mxu0 %v548_v7  ;;  %373 = vmatpush1.bf16.msra.mxu1 %v568_v21  ;;  %v281_v52 = vrot.slane %v276_v50, %v280_v49  ;;  %v285_v53 = vrot.slane %v276_v50, %v284_v51  ;;  %s666_s9 = scalar_lea.vmem %s455_s4, 256  ;;  %p671_p11 = scmp.lt.s32.totalorder %s455_s4, %s455_s4 }
  0x46   :  { %518 = vmatprep.subr.bf16.mxu0 %v549_v8  ;;  %374 = vmatprep.subr.bf16.mxu1 %v569_v22  ;;  %p667_p10 = scmp.ne.s32.totalorder %s455_s4, %s666_s9  ;;  %p672_p12 = scmp.lt.s32.totalorder %s666_s9, %s666_s9 }
  0x48   :  { %p673_p13 = por %p672_p12, %p671_p11 }
  0x49   :  { %519 = vmatpush3.bf16.msra.mxu0 %v550_v9  ;;  %375 = vmatpush1.bf16.msra.mxu1 %v571_v24 }
  0x4a   :  { %520 = vmatprep.subr.bf16.mxu0 %v551_v10  ;;  %376 = vmatprep.subr.bf16.mxu1 %v572_v26  ;;  %p674_p0 = pnand %p673_p13, %p667_p10 }
  0x4d   :  { %521 = vmatpush3.bf16.msra.mxu0 %v552_v14  ;;  %377 = vmatpush1.bf16.msra.mxu1 %v574_v27 }
  0x4e   :  { %522 = vmatprep.subr.bf16.mxu0 %v553_v16  ;;  %378 = vmatprep.subr.bf16.mxu1 %v575_v28 }
  0x51   :  { %523 = vmatpush3.bf16.msra.mxu0 %v554_v18  ;;  %379 = vmatpush1.bf16.msra.mxu1 %v577_v29 }
  0x52   :  { %524 = vmatprep.subr.bf16.mxu0 %v555_v20  ;;  %380 = vmatprep.subr.bf16.mxu1 %v578_v30 }
  0x55   :  { %525 = vmatpush3.bf16.msra.mxu0 %v556_v23  ;;  %381 = vmatpush1.bf16.msra.mxu1 %v580_v31 }
  0x56   :  { %382 = vmatprep.subr.bf16.mxu1 %v581_v32 }
  0x58   :  { %247 = vmatmul.mubr.bf16.vlgmr.msra.gmra.mrb[0].mxu0 %v557_v25 }
  0x59   :  { %383 = vmatpush1.bf16.msra.mxu1 %v583_v33 }
 0x12b   :  { %v526_v35 = vpop.f32.mrb[0].mxu0 }
 0x12c   :  { %v527_v37 = vpop.f32.mrb[1].mxu0 }
 0x12d   :  { %v528_v38 = vadd.f32 %v527_v37, %v526_v35  ;;  %v529_v39 = vpop.f32.mrb[2].mxu0 }
 0x12e   :  { %v530_v40 = vpop.f32.mrb[3].mxu0 }
 0x12f   :  { %v249_v41 = vadd.f32 %v528_v38, %v467_v36  ;;  %v531_v42 = vadd.f32 %v530_v40, %v529_v39 }
 0x131   :  { %v252_v43 = vadd.f32 %v531_v42, %v467_v36  ;;  %v255_v44 = vmax.f32 %v249_v41, 0.0 }
 0x133   :  { %v256_v45 = vmax.f32 %v252_v43, 0.0 }
 0x135   :  { %v257_v46 = vpack.c.bf16 %v256_v45, %v255_v44 }
 0x137   :  { %401 = vmatmul.mubr.bf16.vlgmr.msra.gmra.mrb[0].mxu1 %v257_v46 }
 0x20a   :  { %v402_v54 = vpop.f32.mrb[0].mxu1 }
 0x20b   :  { %v403_v55 = vadd.f32 %v402_v54, %v281_v52  ;;  %v404_v56 = vpop.f32.mrb[1].mxu1 }
 0x20c   :  { %v405_v57 = vadd.f32 %v404_v56, %v285_v53  ;;  %v406_v58 = vpop.f32.mrb[2].mxu1 }
 0x20d   :  { %v502_v59 = vmul.f32 -1.442695, %v403_v55  ;;  %v407_v60 = vadd.f32 %v406_v58, %v281_v52  ;;  %v408_v61 = vpop.f32.mrb[3].mxu1 }
 0x20e   :  { %v503_v62 = vmul.f32 -1.442695, %v405_v57  ;;  %v409_v63 = vadd.f32 %v408_v61, %v285_v53 }
 0x20f   :  { %584 = vpow2.f32 %v502_v59  ;;  %v504_v0 = vmul.f32 -1.442695, %v407_v60 }
 0x210   :  { %586 = vpow2.f32 %v503_v62  ;;  %v505_v1 = vmul.f32 -1.442695, %v409_v63 }
 0x211   :  { %588 = vpow2.f32 %v504_v0 }
 0x212   :  { %590 = vpow2.f32 %v505_v1 }
 0x219   :  { %v585_v2 = vpop.eup %584 }
 0x21a   :  { %v587_v3 = vpop.eup %586  ;;  %v423_v4 = vadd.f32 1.0, %v585_v2 }
 0x21b   :  { %v589_v5 = vpop.eup %588  ;;  %v424_v6 = vadd.f32 1.0, %v587_v3 }
 0x21c   :  { %v591_v7 = vpop.eup %590  ;;  %592 = vrcp.f32 %v423_v4  ;;  %v425_v8 = vadd.f32 1.0, %v589_v5 }
 0x21d   :  { %594 = vrcp.f32 %v424_v6  ;;  %v426_v9 = vadd.f32 1.0, %v591_v7 }
 0x21e   :  { %596 = vrcp.f32 %v425_v8 }
 0x21f   :  { %598 = vrcp.f32 %v426_v9 }
 0x226   :  { %v593_v10 = vpop.eup %592 }
 0x227   :  { %v595_v11 = vpop.eup %594 }
 0x228   :  { %v597_v12 = vpop.eup %596  ;;  %v508_v13 = vpack.c.bf16 %v595_v11, %v593_v10 }
 0x229   :  { %v599_v14 = vpop.eup %598 }
 0x22a   :  { %v509_v15 = vpack.c.bf16 %v599_v14, %v597_v12  ;;  %447 = vst [vmem:[#allocation9] sm:$0xff] %v508_v13 }
 0x22c   :  { %448 = vst [vmem:[#allocation9 + $0x8] sm:$0xff] %v509_v15 }
 0x22d   :  { %677 = shalt.err (!%p674_p0)
}
 0x22e   :  { %s678_s12 = scalar_lea.hbm %s801_s5, 256 }
 0x22f   :  { %p679_p1 = scmp.ne.s32.totalorder %s801_s5, %s678_s12  ;;  %p682_p2 = scmp.lt.u32.totalorder %s678_s12, %s801_s5 }
 0x231   :  { %p684_p3 = pnand %p682_p2, %p679_p1 }
 0x233   :  { %687 = shalt.err (!%p684_p3)
}
 0x234   :  { %460 = dma.vmem_to_hbm [thread:$0]  %s455_s4, 256, %s801_s5, [#allocation5], %s698_s1, %s698_s1, %s699_s17  }
 0x235   :  { %692 = dma.done.wait [#allocation5], 256  }
 0x236   :  { %693 = vsyncadd [#allocation5], 4294967040 }
 0x237   :  { %464 = vsyncpa [#allocation4], 1 }
 0x238   :  { %465 = vsyncpa [#allocation7], 1 }
 0x239   :  { %466 = vsyncpa [#allocation5], 1 }

</bundles_post_ra>
